<compile_context>
chip_gen: v7x
topology: tpu7x:2x2x1
jax: 0.10.0
libtpu: 0.0.40
codegen_flags: <defaults>
</compile_context>

<pallas_src>
import functools
import math

import jax
import jax.numpy as jnp
from jax.experimental import pallas as pl
from jax.experimental.pallas import tpu as pltpu


def _round_down_128(x):
    return max(128, (x // 128) * 128)


def _pick_block_n(n, c, itemsize, max_block_n):
    """Sample-axis tile (multiple of 128 lanes), scaled with C."""
    # Target ~1 MiB of pred per grid step (amortizes ~0.35 us per-step overhead).
    tn = _round_down_128((1 << 20) // max(1, c * itemsize))
    # Keep ~8 materialized (C, TN) f32 temporaries under ~24 MiB so the tile
    # (plus double-buffered inputs) also fits v7x's 64 MiB VMEM comfortably.
    tn = min(tn, _round_down_128((24 << 20) // max(1, c * 4 * 8)))
    if max_block_n is not None:
        tn = min(tn, _round_down_128(max_block_n))
    # Never exceed the (128-padded) batch.
    tn = min(tn, pl.cdiv(n, 128) * 128)
    return tn


def _sce_kernel(pred_ref, labels_ref, loss_ref, *, alpha, beta, n_valid, block_n):
    pid = pl.program_id(0)

    x = pred_ref[...].astype(jnp.float32)         # (C, TN)  f32 upcast in-kernel
    labels = labels_ref[...]                      # (1, TN)  int32
    c, tn = x.shape

    # ---- softmax pieces over the class (sublane) axis: one exp per element ----
    m = jnp.max(x, axis=0, keepdims=True)         # (1, TN)
    z = x - m                                     # (C, TN)
    e = jnp.exp(z)                                # (C, TN)  only per-element transcendental
    sum_exp = jnp.sum(e, axis=0, keepdims=True)   # (1, TN)
    inv_sum = pl.reciprocal(sum_exp, approx=False)  # exact; per-sample, O(TN)
    probs = jnp.clip(e * inv_sum, 1e-7, 1.0)      # (C, TN) clipped softmax
    sum_p = jnp.sum(probs, axis=0, keepdims=True)  # (1, TN) (clip floor matters)

    # ---- one-hot mask and the single fused masked reduction ----
    class_ids = jax.lax.broadcasted_iota(jnp.int32, (c, tn), 0)
    one_hot = class_ids == labels                 # (C, TN) bool (lane broadcast)

    a_w = jnp.float32(alpha)
    b_w = jnp.float32(beta)
    nls = jnp.float32(-math.log(1e-4))            # -log(label clamp floor)

    # masked = alpha*z[label] + beta*nls*probs[label], in one select + one reduce.
    t = a_w * z + (b_w * nls) * probs
    masked = jnp.sum(jnp.where(one_hot, t, 0.0), axis=0, keepdims=True)  # (1, TN)

    # loss_n = alpha*(log(sum_exp) - z[label]) + beta*nls*(sum_p - probs[label])
    loss_row = a_w * jnp.log(sum_exp) + (b_w * nls) * sum_p - masked     # (1, TN)

    # Ragged last tile: select-mask (never multiply) so garbage-column NaN/Inf
    # can't leak into the output.
    col = pid * block_n + jax.lax.broadcasted_iota(jnp.int32, (1, tn), 1)
    loss_ref[...] = jnp.where(col < n_valid, loss_row, 0.0)


def sce_loss(pred, labels, *, alpha, beta, num_classes, max_block_n=None):
    """Symmetric cross-entropy. pred: (N, C) logits (any float dtype), labels: (N,) int."""
    n, c = pred.shape
    assert c == num_classes
    itemsize = jnp.dtype(pred.dtype).itemsize

    tn = _pick_block_n(n, c, itemsize, max_block_n)
    grid = (pl.cdiv(n, tn),)
    n_pad = grid[0] * tn

    pred_t = jnp.transpose(pred)                       # (C, N): samples lane-dense
    labels_row = labels.astype(jnp.int32).reshape(1, n)

    kernel = functools.partial(
        _sce_kernel, alpha=float(alpha), beta=float(beta), n_valid=n, block_n=tn)

    # VMEM budget from the actual tile (double-buffered inputs + f32 working set).
    vmem_limit = int(min(
        48 << 20,
        max(4 << 20,
            2 * 2 * tn * c * itemsize + 8 * tn * c * 4 + 16 * tn * 4 + (2 << 20))))

    cost = pl.CostEstimate(
        flops=12 * n * c,
        transcendentals=n * c + 2 * n,
        bytes_accessed=n * c * itemsize + n * 4 + n_pad * 4)

    losses = pl.pallas_call(
        kernel,
        out_shape=jax.ShapeDtypeStruct((1, n_pad), jnp.float32),
        grid_spec=pltpu.PrefetchScalarGridSpec(
            num_scalar_prefetch=0,
            grid=grid,
            in_specs=[
                pl.BlockSpec((c, tn), lambda i: (0, i)),   # pred (C, TN) tile
                pl.BlockSpec((1, tn), lambda i: (0, i)),   # labels (1, TN) tile
            ],
            out_specs=pl.BlockSpec((1, tn), lambda i: (0, i))),
        compiler_params=pltpu.CompilerParams(
            dimension_semantics=("parallel",),   # independent per-tile partials
            vmem_limit_bytes=vmem_limit),
        cost_estimate=cost,
    )(pred_t, labels_row)

    # Invalid (padded) lanes were zeroed in-kernel; final mean in the wrapper.
    return jnp.sum(losses) * jnp.float32(1.0 / n)


def _reference_sce(pred, labels, alpha, beta, num_classes):
    # Pure-JAX reference mirroring the PyTorch module.
    logits = pred.astype(jnp.float32)
    log_probs = jax.nn.log_softmax(logits, axis=1)
    one_hot = jax.nn.one_hot(labels, num_classes, dtype=jnp.float32)
    ce = -jnp.mean(jnp.sum(one_hot * log_probs, axis=1))
    probs = jnp.clip(jax.nn.softmax(logits, axis=1), 1e-7, 1.0)
    lbl = jnp.clip(one_hot, 1e-4, 1.0)
    rce = -jnp.sum(probs * jnp.log(lbl), axis=1)
    return alpha * ce + beta * jnp.mean(rce)


if __name__ == "__main__":
    key = jax.random.PRNGKey(0)
    k_pred, k_lbl = jax.random.split(key)

    # N deliberately not a multiple of the row tile -> exercises grid + masking.
    N, NUM_CLASSES = 1000, 10
    alpha, beta = 0.1, 1.0

    pred = jax.random.normal(k_pred, (N, NUM_CLASSES), dtype=jnp.float32)
    labels = jax.random.randint(k_lbl, (N,), 0, NUM_CLASSES, dtype=jnp.int32)

    loss = sce_loss(pred, labels, alpha=alpha, beta=beta,
                    num_classes=NUM_CLASSES, max_block_n=256)   # grid of 4 tiles
    loss = jax.block_until_ready(loss)

    ref = _reference_sce(pred, labels, alpha, beta, NUM_CLASSES)
    # Exact reciprocal in-kernel -> tight tolerance.
    assert jnp.allclose(loss, ref, rtol=1e-4, atol=1e-4), (loss, ref)

    print("KERNEL_OK")
</pallas_src>

<mosaic_0001>
module attributes {stable_mosaic.version = 11 : i64} {
  func.func @_sce_kernel(%arg0: i32, %arg1: memref<10x256xf32, #tpu.memory_space<vmem>>, %arg2: memref<1x256xi32, #tpu.memory_space<vmem>>, %arg3: memref<1x256xf32, #tpu.memory_space<vmem>>) attributes {dimension_semantics = [#tpu.dimension_semantics<parallel>], iteration_bounds = array<i64: 4>, scalar_prefetch = 0 : i64, scratch_operands = 0 : i64, tpu.core_type = #tpu.core_type<tc>, window_params = [{transform_indices = @transform_0, window_bounds = array<i64: 10, 256>}, {transform_indices = @transform_1, window_bounds = array<i64: 1, 256>}, {transform_indices = @transform_2, window_bounds = array<i64: 1, 256>}]} {
    %c0 = arith.constant 0 : index
    %c0_0 = arith.constant 0 : index
    %0 = vector.load %arg1[%c0, %c0_0] : memref<10x256xf32, #tpu.memory_space<vmem>>, vector<10x256xf32>
    %c0_1 = arith.constant 0 : index
    %c0_2 = arith.constant 0 : index
    %1 = vector.load %arg2[%c0_1, %c0_2] : memref<1x256xi32, #tpu.memory_space<vmem>>, vector<1x256xi32>
    %cst = arith.constant dense<0xFF800000> : vector<256xf32>
    %2 = vector.multi_reduction <maximumf>, %0, %cst [0] : vector<10x256xf32> to vector<256xf32>
    %3 = vector.shape_cast %2 : vector<256xf32> to vector<1x256xf32>
    %4 = vector.broadcast %3 : vector<1x256xf32> to vector<10x256xf32>
    %5 = arith.subf %0, %4 : vector<10x256xf32>
    %6 = math.exp %5 : vector<10x256xf32>
    %cst_3 = arith.constant dense<0.000000e+00> : vector<256xf32>
    %7 = vector.multi_reduction <add>, %6, %cst_3 [0] : vector<10x256xf32> to vector<256xf32>
    %8 = vector.shape_cast %7 : vector<256xf32> to vector<1x256xf32>
    %9 = tpu.reciprocal %8 : vector<1x256xf32> -> vector<1x256xf32>
    %10 = vector.broadcast %9 : vector<1x256xf32> to vector<10x256xf32>
    %11 = arith.mulf %6, %10 : vector<10x256xf32>
    %cst_4 = arith.constant 1.000000e-07 : f32
    %cst_5 = arith.constant 1.000000e+00 : f32
    %12 = vector.broadcast %cst_4 : f32 to vector<10x256xf32>
    %13 = arith.maximumf %12, %11 : vector<10x256xf32>
    %14 = vector.broadcast %cst_5 : f32 to vector<10x256xf32>
    %15 = arith.minimumf %14, %13 : vector<10x256xf32>
    %cst_6 = arith.constant dense<0.000000e+00> : vector<256xf32>
    %16 = vector.multi_reduction <add>, %15, %cst_6 [0] : vector<10x256xf32> to vector<256xf32>
    %17 = vector.shape_cast %16 : vector<256xf32> to vector<1x256xf32>
    %18 = tpu.iota {dimensions = array<i32: 0>} : vector<10x256xi32>
    %19 = vector.broadcast %1 : vector<1x256xi32> to vector<10x256xi32>
    %20 = arith.cmpi eq, %18, %19 : vector<10x256xi32>
    %cst_7 = arith.constant 1.000000e-01 : f32
    %21 = vector.broadcast %cst_7 : f32 to vector<10x256xf32>
    %22 = arith.mulf %21, %5 : vector<10x256xf32>
    %cst_8 = arith.constant 1.000000e+00 : f32
    %cst_9 = arith.constant 9.21034049 : f32
    %23 = arith.mulf %cst_8, %cst_9 : f32
    %24 = vector.broadcast %23 : f32 to vector<10x256xf32>
    %25 = arith.mulf %24, %15 : vector<10x256xf32>
    %26 = arith.addf %22, %25 : vector<10x256xf32>
    %cst_10 = arith.constant 0.000000e+00 : f32
    %27 = vector.broadcast %cst_10 : f32 to vector<10x256xf32>
    %28 = arith.select %20, %26, %27 : vector<10x256xi1>, vector<10x256xf32>
    %cst_11 = arith.constant dense<0.000000e+00> : vector<256xf32>
    %29 = vector.multi_reduction <add>, %28, %cst_11 [0] : vector<10x256xf32> to vector<256xf32>
    %30 = vector.shape_cast %29 : vector<256xf32> to vector<1x256xf32>
    %31 = math.log %8 : vector<1x256xf32>
    %cst_12 = arith.constant 1.000000e-01 : f32
    %32 = vector.broadcast %cst_12 : f32 to vector<1x256xf32>
    %33 = arith.mulf %32, %31 : vector<1x256xf32>
    %cst_13 = arith.constant 1.000000e+00 : f32
    %cst_14 = arith.constant 9.21034049 : f32
    %34 = arith.mulf %cst_13, %cst_14 : f32
    %35 = vector.broadcast %34 : f32 to vector<1x256xf32>
    %36 = arith.mulf %35, %17 : vector<1x256xf32>
    %37 = arith.addf %33, %36 : vector<1x256xf32>
    %38 = arith.subf %37, %30 : vector<1x256xf32>
    %c256_i32 = arith.constant 256 : i32
    %39 = arith.muli %arg0, %c256_i32 : i32
    %40 = tpu.iota {dimensions = array<i32: 1>} : vector<1x256xi32>
    %41 = vector.broadcast %39 : i32 to vector<1x256xi32>
    %42 = arith.addi %41, %40 : vector<1x256xi32>
    %c1000_i32 = arith.constant 1000 : i32
    %43 = vector.broadcast %c1000_i32 : i32 to vector<1x256xi32>
    %44 = arith.cmpi slt, %42, %43 : vector<1x256xi32>
    %cst_15 = arith.constant 0.000000e+00 : f32
    %45 = vector.broadcast %cst_15 : f32 to vector<1x256xf32>
    %46 = arith.select %44, %38, %45 : vector<1x256xi1>, vector<1x256xf32>
    %c0_16 = arith.constant 0 : index
    %c0_17 = arith.constant 0 : index
    %47 = vector.load %arg3[%c0_16, %c0_17] : memref<1x256xf32, #tpu.memory_space<vmem>>, vector<1x256xf32>
    tpu.vector_store %arg3[%c0_16, %c0_17], %46 {strides = array<i32>} : memref<1x256xf32, #tpu.memory_space<vmem>>, vector<1x256xf32>,
    return
  }
  func.func @transform_0(%arg0: i32) -> (i32, i32) {
    %c0_i32 = arith.constant 0 : i32
    %c0_i32_0 = arith.constant 0 : i32
    return %c0_i32, %arg0 : i32, i32
  }
  func.func @transform_1(%arg0: i32) -> (i32, i32) {
    %c0_i32 = arith.constant 0 : i32
    %c0_i32_0 = arith.constant 0 : i32
    return %c0_i32, %arg0 : i32, i32
  }
  func.func @transform_2(%arg0: i32) -> (i32, i32) {
    %c0_i32 = arith.constant 0 : i32
    %c0_i32_0 = arith.constant 0 : i32
    return %c0_i32, %arg0 : i32, i32
  }
}

</mosaic_0001>

<bundles_post_ra>
// kernel: tpu_custom_call.1
= control target key start
LH: loop header
LB: loop body
LE: loop exit
PB: predicated region body
PF: predicated region fallthrough
CT: control target
= control target key end

     0   :  { %7 = vsyncpa [#allocation3], 0  ;;  %s965_s0 = inlined_call_operand.hbm [shape: f32[10,1000], index: 0, kind: input, shape index: {}]   ;;  %s966_s1 = inlined_call_operand.hbm [shape: s32[1,1000], index: 1, kind: input, shape index: {}]   ;;  %s967_s2 = inlined_call_operand.hbm [shape: f32[1,1024], index: 2, kind: output, shape index: {}]  }
   0x1   :  { %9 = vsyncpa [#allocation3 + $0x1], 0 }
   0x2   :  { %10 = vsyncpa [#allocation6], 0 }
   0x3   :  { %12 = vsyncpa [#allocation6 + $0x1], 0 }
   0x4   :  { %13 = vsyncpa [#allocation4], 0 }
   0x5   :  { %15 = vsyncpa [#allocation4 + $0x1], 0  ;;  %s731_s9 = smov 0   ;;  %s733_s10 = smov 0  }
   0x6   :  { %s735_s11 = smov 0   ;;  %s737_s12 = smov 0  }
   0x7 LB: > { %s752_s13 = sadd.s32 4294967295, %s707_s12   ;;  %s484_s14 = sadd.s32 4294967294, %s707_s12   ;;  %s707_s12 = sphi %s737_s12, %s984_s12   ;;  %s703_s11 = sphi %s735_s11, %s983_s11   ;;  %s699_s10 = sphi %s733_s10, %s982_s10   ;;  %s695_s9 = sphi %s731_s9, %s981_s9  }
   0x8   : > { %s756_s15 = sadd.s32 1, %s707_s12   ;;  %s28_s16 = sadd.s32 1, %s703_s11 }
   0x9   : > { %s25_s17 = ssub.s32 %s707_s12, %s756_s15  ;;  %p35_p0 = scmp.ne.s32.totalorder %s703_s11, %s699_s10 }
   0xa   : > { %p26_p1 = scmp.eq.s32.totalorder %s25_s17, 0  ;;  %p36_p2 = scmp.eq.s32.totalorder %s707_s12, 0 }
   0xb   : > { %p41_p3 = scmp.ne.s32.totalorder %s699_s10, %s695_s9  ;;  %p42_p4 = scmp.eq.s32.totalorder %s752_s13, 0 }
   0xc   : > { %s768_s18 = scalar_select %p26_p1, %s703_s11, %s28_s16  }
   0xd   : > { %p770_p5 = por %p36_p2, %p35_p0  ;;  %p774_p6 = por %p42_p4, %p41_p3 }
   0xe   : > { %p91_p7 = scmp.eq.s32.totalorder %s752_s13, 3  ;;  %p97_p8 = scmp.eq.s32.totalorder %s484_s14, 3 }
   0xf   : > { %s971_s20 = scalar_select %p774_p6, 1, 0 }
  0x10   : > { %p523_p9 = scmp.lt.s32.totalorder %s707_s12, 4  ;;  %p780_p10 = por %p91_p7, %p35_p0 }
  0x11   : > { %p784_p11 = por %p97_p8, %p41_p3  ;;  %s789_s23 = sand.u32 1, %s703_s11  }
  0x12   : > { %s972_s21 = scalar_select %p780_p10, 1, 0 }
  0x13   : > { %s973_s22 = scalar_select %p784_p11, 1, 0 }
  0x14   : > { %s503_s24 = sshll.u32 %s707_s12, 8  ;;  %s487_s25 = sshll.u32 %s789_s23, 5 }
  0x15   : > { %s796_s28 = scalar_lea.hbm %s965_s0, %s503_s24  ;;  %s121_s29 = scalar_lea.vmem [#allocation2], %s487_s25 }
  0x16   : > { %s128_s30 = sshll.u32 %s121_s29, 4  ;;  %p800_p12 = pnand %p523_p9, %p770_p5  ;;  %s804_s30 = int_to_ptr.vmem [resolvable:$true] %s128_s30 }
  0x17   : > { %s118_s4 = scalar_lea.sflag [#allocation3], %s789_s23  ;;  %s577_s5 = scalar_lea.hbm %s796_s28, 512 }
  0x18   : > { %p578_p0 = scmp.ne.s32.totalorder %s796_s28, %s577_s5  ;;  %p579_p1 = pneg %p800_p12 }
  0x19   : > { %s582_s8 = scalar_lea.hbm %s965_s0, 2048  ;;  %p583_p4 = scmp.lt.u32.totalorder %s796_s28, %s965_s0 }
  0x1a   : > { %p580_p2 = pnand %p579_p1, %p578_p0  ;;  %p584_p5 = scmp.lt.u32.totalorder %s582_s8, %s577_s5 }
  0x1b   : > { %p586_p8 = scmp.lt.u32.totalorder %s577_s5, %s796_s28 }
  0x1c   : > { %p581_p3 = pneg %p580_p2  ;;  %p585_p7 = por %p584_p5, %p583_p4 }
  0x1e   : > { %p587_p9 = por %p586_p8, %p585_p7 }
  0x20   : > { %p588_p13 = pnand %p587_p9, %p581_p3 }
  0x22   : > { %591 = shalt.err (!%p588_p13)
}
  0x23   : > { %s592_s17 = scalar_lea.vmem %s804_s30, 512  ;;  %s709_s19 = smov [#allocation2]  }
  0x24   : > { %p593_p0 = scmp.ne.s32.totalorder %s804_s30, %s592_s17  ;;  %s597_s24 = sshll.u32 %s709_s19, 4  ;;  %s598_s24 = int_to_ptr.vmem [resolvable:$false] %s597_s24 }
  0x25   : > { %s599_s25 = scalar_lea.vmem %s598_s24, 1024  ;;  %p600_p10 = scmp.lt.s32.totalorder %s804_s30, %s598_s24 }
  0x26   : > { %p595_p2 = pnand %p593_p0, %p579_p1  ;;  %p601_p4 = scmp.lt.s32.totalorder %s599_s25, %s592_s17 }
  0x28   : > { %p596_p11 = pneg %p595_p2  ;;  %p602_p5 = por %p601_p4, %p600_p10 }
  0x2a   : > { %p603_p7 = pnand %p602_p5, %p596_p11 }
  0x2c   : > { %606 = shalt.err (!%p603_p7)
}
  0x2d   : > { %s710_s26 = smov 1024   ;;  %s711_s27 = smov 256  }
  0x2e   : > { %s712_s29 = smov 16   ;;  %p155_p13 = scmp.lt.s32.totalorder %s707_s12, 5 }
  0x2f   : > { %515 = dma.hbm_to_vmem [thread:$0]  (!%p800_p12), %s796_s28, 512, %s804_s30, %s118_s4, %s710_s26, %s711_s27, %s712_s29  }
  0x30   : > { %s490_s5 = sshll.u32 %s789_s23, 1  ;;  %s504_s6 = sshll.u32 %s707_s12, 5 }
  0x31   : > { %p975_p10 = scmp.ge.s32.totalorder %s707_s12, 1  ;;  %s847_s16 = scalar_lea.hbm %s966_s1, %s504_s6 }
  0x32   : > { %s142_s17 = scalar_lea.vmem [#allocation5], %s490_s5  ;;  %s139_s28 = scalar_lea.sflag [#allocation6], %s789_s23 }
  0x33   : > { %p840_p11 = pnand %p975_p10, %p155_p13  ;;  %s150_s19 = sshll.u32 %s142_s17, 4  ;;  %s151_s19 = int_to_ptr.vmem [resolvable:$true] %s150_s19 }
  0x34   : > { %s607_s30 = scalar_lea.hbm %s847_s16, 32  ;;  %s612_s25 = scalar_lea.hbm %s966_s1, 128 }
  0x35   : > { %s976_s7 = scalar_select %p840_p11, 1, 0 }
  0x36   : > { %p608_p3 = scmp.ne.s32.totalorder %s847_s16, %s607_s30  ;;  %p613_p0 = scmp.lt.u32.totalorder %s847_s16, %s966_s1 }
  0x37   : > { %p614_p2 = scmp.lt.u32.totalorder %s612_s25, %s607_s30  ;;  %p616_p5 = scmp.lt.u32.totalorder %s607_s30, %s847_s16 }
  0x38   : > { %p610_p8 = pnand %p608_p3, %p579_p1 }
  0x39   : > { %p615_p4 = por %p614_p2, %p613_p0 }
  0x3a   : > { %p611_p9 = pneg %p610_p8 }
  0x3b   : > { %p617_p7 = por %p616_p5, %p615_p4 }
  0x3d   : > { %p618_p13 = pnand %p617_p7, %p611_p9 }
  0x3f   : > { %621 = shalt.err (!%p618_p13)
}
  0x40   : > { %s622_s23 = scalar_lea.vmem %s151_s19, 32  ;;  %s713_s29 = smov [#allocation5]  }
  0x41   : > { %p623_p10 = scmp.ne.s32.totalorder %s151_s19, %s622_s23  ;;  %s627_s5 = sshll.u32 %s713_s29, 4  ;;  %s628_s5 = int_to_ptr.vmem [resolvable:$false] %s627_s5 }
  0x42   : > { %s629_s6 = scalar_lea.vmem %s628_s5, 64  ;;  %p630_p6 = scmp.lt.s32.totalorder %s151_s19, %s628_s5 }
  0x43   : > { %p625_p3 = pnand %p623_p10, %p579_p1  ;;  %p631_p11 = scmp.lt.s32.totalorder %s629_s6, %s622_s23 }
  0x45   : > { %p626_p8 = pneg %p625_p3  ;;  %p632_p0 = por %p631_p11, %p630_p6 }
  0x47   : > { %p633_p2 = pnand %p632_p0, %p626_p8 }
  0x49   : > { %636 = shalt.err (!%p633_p2)
}
  0x4a   : > { %518 = dma.hbm_to_vmem [thread:$0]  (!%p800_p12), %s847_s16, 32, %s151_s19, %s139_s28  }
  0x4b   : > { %p977_p9 = scmp.ne.s32.totalorder %s976_s7, 0 }
  0x4c   : > { %s872_s8 = sand.u32 (!%p977_p9), 1, %s699_s10   ;;  %p978_p1 = scmp.ne.s32.totalorder (!%p977_p9), %s971_s20, 0 }
  0x4d   : > { %159 = sbr.rel (%p977_p9) target bundleno = 198 (0xc6), region = 28  ;;  %s494_s14 = sshll.u32 (!%p977_p9), %s872_s8, 5 }
  0x4e   : > { %s162_s17 = scalar_lea.sflag (!%p977_p9), [#allocation3], %s872_s8  ;;  %s165_s30 = scalar_lea.vmem (!%p977_p9), [#allocation2], %s494_s14 }
  0x54   : > { %682 = dma.done.wait (%p978_p1), %s162_s17, 512  }
  0x55   : > { %684 = vsyncadd (%p978_p1), %s162_s17, 4294966784  ;;  %s495_s3 = sshll.u32 %s872_s8, 1  ;;  %s171_s7 = scalar_lea.sflag [#allocation6], %s872_s8 }
  0x56   : > { %s884_s16 = scalar_lea.vmem [#allocation5], %s495_s3 }
  0x57   : > { %686 = dma.done.wait (%p978_p1), %s171_s7, 32  }
  0x58   : > { %688 = vsyncadd (%p978_p1), %s171_s7, 4294967264  ;;  %vm208_vm0 = vcmask 1041408   ;;  %v203_v0 = vld [vmem:[%s165_s30] sm:$0xff]  ;;  %v204_v1 = vld [vmem:[%s165_s30 + $0x8] sm:$0xff]  ;;  %v283_v46 = vlaneseq  ;;  %s497_s20 = sshll.u32 %s752_s13, 8  ;;  %s199_s19 = scalar_lea.vmem [#allocation7], %s495_s3 }
  0x59   : > { %v205_v2 = vld [vmem:[%s165_s30 + $0x10] sm:$0x3]  ;;  %v206_v3 = vld [vmem:[%s165_s30 + $0x18] sm:$0x3]  ;;  %v207_v51 = vld [vmem:[%s884_s16] sm:$0x3] }
  0x5a   : > { %v209_v4 = vsel %vm208_vm0, %v205_v2, -inf  ;;  %v217_v6 = vsel %vm208_vm0, %v206_v3, -inf  ;;  %v895_v49 = vshrl.u32 %v283_v46, 7  ;;  %s391_s28 = sshll.u32 %s199_s19, 4  ;;  %s505_s4 = sshll.u32 %s752_s13, 5  ;;  %vm373_vm7 = vcmp.lt.s32.totalorder %v283_v46, 256  ;;  %s919_s28 = int_to_ptr.vmem [resolvable:$true] %s391_s28 }
  0x5b   : > { %v210_v5 = vmax.f32 %v203_v0, %v209_v4  ;;  %v218_v7 = vmax.f32 %v204_v1, %v217_v6  ;;  %s924_s26 = scalar_lea.hbm %s967_s2, %s505_s4  ;;  %s377_s27 = scalar_lea.sflag [#allocation4], %s872_s8 }
  0x5c   : > { %v288_v50 = vsub.s32 0, %v895_v49  ;;  %v292_v52 = vsub.s32 1, %v895_v49  ;;  %v285_v61 = vadd.s32 8, %v895_v49  ;;  %s637_s23 = scalar_lea.vmem %s919_s28, 32  ;;  %p979_p12 = scmp.ne.s32.totalorder %s972_s21, 0 }
  0x5d   : > { %v211_v8 = vrot.slane %v210_v5, 4  ;;  %v219_v9 = vrot.slane %v218_v7, 4  ;;  %p638_p6 = scmp.ne.s32.totalorder %s919_s28, %s637_s23  ;;  %s715_s13 = smov [#allocation7]  }
  0x5e   : > { %v289_v53 = vrot.slane %v207_v51, %v288_v50  ;;  %v293_v55 = vrot.slane %v207_v51, %v292_v52  ;;  %s641_s29 = sshll.u32 %s715_s13, 4  ;;  %s642_s29 = int_to_ptr.vmem [resolvable:$false] %s641_s29 }
  0x5f   : > { %v212_v10 = vmax.f32 %v210_v5, %v211_v8  ;;  %v220_v11 = vmax.f32 %v218_v7, %v219_v9  ;;  %p639_p11 = pnand %p638_p6, %p979_p12  ;;  %s643_s5 = scalar_lea.vmem %s642_s29, 64 }
  0x60   : > { %vm294_vm1 = vcmp.eq.s32.totalorder %v895_v49, %v289_v53  ;;  %vm295_vm2 = vcmp.eq.s32.totalorder %v895_v49, %v293_v55  ;;  %vm296_vm3 = vcmp.eq.s32.totalorder %v285_v61, %v289_v53  ;;  %vm297_vm4 = vcmp.eq.s32.totalorder %v285_v61, %v293_v55  ;;  %p644_p5 = scmp.lt.s32.totalorder %s919_s28, %s642_s29  ;;  %p645_p7 = scmp.lt.s32.totalorder %s643_s5, %s637_s23 }
  0x61   : > { %v213_v12 = vrot.slane %v212_v10, 2  ;;  %v221_v13 = vrot.slane %v220_v11, 2  ;;  %v346_v53 = vstv %s497_s20  ;;  %p640_p4 = pneg %p639_p11 }
  0x62   : > { %p646_p13 = por %p645_p7, %p644_p5 }
  0x63   : > { %v214_v14 = vmax.f32 %v212_v10, %v213_v12  ;;  %v222_v15 = vmax.f32 %v220_v11, %v221_v13 }
  0x64   : > { %p647_p10 = pnand %p646_p13, %p640_p4 }
  0x65   : > { %v215_v16 = vrot.slane %v214_v14, 1  ;;  %v223_v17 = vrot.slane %v222_v15, 1 }
  0x67   : > { %v216_v18 = vmax.f32 %v214_v14, %v215_v16  ;;  %v224_v19 = vmax.f32 %v222_v15, %v223_v17 }
  0x69   : > { %v225_v20 = vsub.f32 %v203_v0, %v216_v18  ;;  %v227_v21 = vsub.f32 %v205_v2, %v216_v18  ;;  %v226_v22 = vsub.f32 %v204_v1, %v224_v19  ;;  %v228_v23 = vsub.f32 %v206_v3, %v224_v19 }
  0x6b   : > { %v229_v24 = vmul.f32 1.442695, %v225_v20  ;;  %v233_v25 = vmul.f32 1.442695, %v227_v21  ;;  %v231_v26 = vmul.f32 1.442695, %v226_v22 }
  0x6c   : > { %v235_v27 = vmul.f32 1.442695, %v228_v23  ;;  %v298_v4 = vmul.f32 0.1, %v225_v20  ;;  %v300_v5 = vmul.f32 0.1, %v227_v21 }
  0x6d   : > { %561 = vpow2.f32 %v229_v24  ;;  %v299_v8 = vmul.f32 0.1, %v226_v22  ;;  %v301_v9 = vmul.f32 0.1, %v228_v23 }
  0x6e   : > { %563 = vpow2.f32 %v231_v26 }
  0x6f   : > { %565 = vpow2.f32 %v233_v25 }
  0x70   : > { %567 = vpow2.f32 %v235_v27 }
  0x77   : > { %v562_v28 = vpop.eup %561 }
  0x78   : > { %v564_v29 = vpop.eup %563 }
  0x79   : > { %v566_v30 = vpop.eup %565 }
  0x7a   : > { %v568_v31 = vpop.eup %567  ;;  %v237_v32 = vsel %vm208_vm0, %v566_v30, 0.0 }
  0x7b   : > { %v238_v33 = vadd.f32 %v562_v28, %v237_v32  ;;  %v245_v34 = vsel %vm208_vm0, %v568_v31, 0.0 }
  0x7c   : > { %v246_v35 = vadd.f32 %v564_v29, %v245_v34 }
  0x7d   : > { %v239_v36 = vrot.slane %v238_v33, 4 }
  0x7e   : > { %v247_v37 = vrot.slane %v246_v35, 4 }
  0x7f   : > { %v240_v38 = vadd.f32 %v239_v36, %v238_v33 }
  0x80   : > { %v248_v39 = vadd.f32 %v247_v37, %v246_v35 }
  0x81   : > { %v241_v40 = vrot.slane %v240_v38, 2 }
  0x82   : > { %v249_v41 = vrot.slane %v248_v39, 2 }
  0x83   : > { %v242_v42 = vadd.f32 %v241_v40, %v240_v38 }
  0x84   : > { %v250_v43 = vadd.f32 %v249_v41, %v248_v39  ;;  %v344_v39 = vand.u32 127, %v283_v46 }
  0x85   : > { %v243_v44 = vrot.slane %v242_v42, 1 }
  0x86   : > { %v251_v45 = vrot.slane %v250_v43, 1  ;;  %v345_v52 = vadd.s32 128, %v344_v39 }
  0x87   : > { %v244_v47 = vadd.f32 %v243_v44, %v242_v42 }
  0x88   : > { %v252_v48 = vadd.f32 %v251_v45, %v250_v43 }
  0x89   : > { %569 = vrcp.f32 %v244_v47 }
  0x8a   : > { %571 = vrcp.f32 %v252_v48 }
  0x8b   : > { %573 = vlog2.f32 %v244_v47 }
  0x8c   : > { %575 = vlog2.f32 %v252_v48 }
  0x93   : > { %v570_v54 = vpop.eup %569 }
  0x94   : > { %v572_v56 = vpop.eup %571  ;;  %v255_v57 = vmul.f32 %v570_v54, %v562_v28  ;;  %v257_v58 = vmul.f32 %v570_v54, %v566_v30 }
  0x95   : > { %v256_v59 = vmul.f32 %v572_v56, %v564_v29  ;;  %v258_v60 = vmul.f32 %v572_v56, %v568_v31  ;;  %v574_v30 = vpop.eup %573 }
  0x96   : > { %v259_v62 = vmax.f32 %v255_v57, 1e-07  ;;  %v261_v63 = vmax.f32 %v257_v58, 1e-07  ;;  %v576_v34 = vpop.eup %575  ;;  %v331_v42 = vmul.f32 0.6931472, %v574_v30 }
  0x97   : > { %v260_v0 = vmax.f32 %v256_v59, 1e-07  ;;  %v262_v1 = vmax.f32 %v258_v60, 1e-07  ;;  %v333_v45 = vmul.f32 0.6931472, %v576_v34 }
  0x98   : > { %v263_v2 = vmin.f32 %v259_v62, 1.0  ;;  %v265_v3 = vmin.f32 %v261_v63, 1.0  ;;  %v334_v56 = vmul.f32 0.1, %v331_v42  ;;  %v714_v60 = vmov 1966171168  }
  0x99   : > { %v264_v6 = vmin.f32 %v260_v0, 1.0  ;;  %v266_v7 = vmin.f32 %v262_v1, 1.0  ;;  %v335_v59 = vmul.f32 0.1, %v333_v45  ;;  %v357_v61 = vunpack.c.l.s4 %v714_v60 }
  0x9a   : > { %v267_v10 = vsel %vm208_vm0, %v265_v3, 0.0  ;;  %v302_v11 = vmul.f32 9.2103405, %v263_v2  ;;  %v304_v12 = vmul.f32 9.2103405, %v265_v3  ;;  %v347_v0 = vadd.s32 %v346_v53, %v344_v39 }
  0x9b   : > { %v268_v13 = vadd.f32 %v267_v10, %v263_v2  ;;  %v275_v14 = vsel %vm208_vm0, %v266_v7, 0.0  ;;  %v303_v15 = vmul.f32 9.2103405, %v264_v6  ;;  %v305_v16 = vmul.f32 9.2103405, %v266_v7 }
  0x9c   : > { %v276_v17 = vadd.f32 %v275_v14, %v264_v6  ;;  %v306_v18 = vadd.f32 %v302_v11, %v298_v4  ;;  %v308_v19 = vadd.f32 %v304_v12, %v300_v5  ;;  %v348_v3 = vadd.s32 %v346_v53, %v345_v52 }
  0x9d   : > { %v269_v20 = vrot.slane %v268_v13, 4  ;;  %v307_v21 = vadd.f32 %v303_v15, %v299_v8  ;;  %v309_v24 = vadd.f32 %v305_v16, %v301_v9  ;;  %v358_v8 = vunpack.c.0.s8 %v357_v61 }
  0x9e   : > { %v277_v25 = vrot.slane %v276_v17, 4  ;;  %v310_v22 = vsel %vm294_vm1, %v306_v18, 0.0  ;;  %v312_v23 = vsel %vm296_vm3, %v308_v19, 0.0  ;;  %vm349_vm5 = vcmp.lt.s32.totalorder %v347_v0, 1000 }
  0x9f   : > { %v270_v26 = vadd.f32 %v269_v20, %v268_v13  ;;  %v311_v27 = vsel %vm295_vm2, %v307_v21, 0.0  ;;  %v313_v28 = vsel %vm297_vm4, %v309_v24, 0.0  ;;  %v314_v29 = vsel %vm208_vm0, %v312_v23, 0.0 }
  0xa0   : > { %v278_v31 = vadd.f32 %v277_v25, %v276_v17  ;;  %v315_v32 = vadd.f32 %v314_v29, %v310_v22  ;;  %v322_v33 = vsel %vm208_vm0, %v313_v28, 0.0  ;;  %vm350_vm6 = vcmp.lt.s32.totalorder %v348_v3, 1000 }
  0xa1   : > { %v271_v35 = vrot.slane %v270_v26, 2  ;;  %v323_v36 = vadd.f32 %v322_v33, %v311_v27  ;;  %v361_v13 = vsub.s32 %v358_v8, %v895_v49 }
  0xa2   : > { %v279_v37 = vrot.slane %v278_v31, 2  ;;  %v316_v38 = vrot.slane %v315_v32, 4 }
  0xa3   : > { %v272_v40 = vadd.f32 %v271_v35, %v270_v26  ;;  %v324_v41 = vrot.slane %v323_v36, 4 }
  0xa4   : > { %v280_v43 = vadd.f32 %v279_v37, %v278_v31  ;;  %v317_v44 = vadd.f32 %v316_v38, %v315_v32 }
  0xa5   : > { %v273_v47 = vrot.slane %v272_v40, 1  ;;  %v325_v48 = vadd.f32 %v324_v41, %v323_v36 }
  0xa6   : > { %v281_v50 = vrot.slane %v280_v43, 1  ;;  %v318_v51 = vrot.slane %v317_v44, 2 }
  0xa7   : > { %v274_v54 = vadd.f32 %v273_v47, %v272_v40  ;;  %v326_v55 = vrot.slane %v325_v48, 2 }
  0xa8   : > { %v282_v57 = vadd.f32 %v281_v50, %v280_v43  ;;  %v319_v58 = vadd.f32 %v318_v51, %v317_v44 }
  0xa9   : > { %v327_v62 = vadd.f32 %v326_v55, %v325_v48  ;;  %v336_v63 = vmul.f32 9.2103405, %v274_v54 }
  0xaa   : > { %v320_v1 = vrot.slane %v319_v58, 1  ;;  %v337_v2 = vmul.f32 9.2103405, %v282_v57 }
  0xab   : > { %v328_v4 = vrot.slane %v327_v62, 1  ;;  %v338_v5 = vadd.f32 %v336_v63, %v334_v56 }
  0xac   : > { %v321_v6 = vadd.f32 %v320_v1, %v319_v58  ;;  %v339_v7 = vadd.f32 %v337_v2, %v335_v59 }
  0xad   : > { %v329_v9 = vadd.f32 %v328_v4, %v327_v62 }
  0xae   : > { %v340_v10 = vsub.f32 %v338_v5, %v321_v6 }
  0xaf   : > { %v341_v11 = vsub.f32 %v339_v7, %v329_v9 }
  0xb0   : > { %v351_v12 = vsel %vm349_vm5, %v340_v10, 0.0 }
  0xb1   : > { %v352_v14 = vsel %vm350_vm6, %v341_v11, 0.0 }
  0xb2   : > { %v355_v15 = vcombine.low %v351_v12, %v352_v14 }
  0xb4   : > { %v362_v16 = vrot.slane %v355_v15, %v361_v13 }
  0xb6   : > { %v369_v17 = vrot.slane %v362_v16, %v361_v13 }
  0xb8   : > { %375 = vst.msk [vmem:[%s199_s19] sm:$0x3] %vm373_vm7, %v369_v17 }
  0xb9   : > { %650 = shalt.err (!%p647_p10)
}
  0xba   : > { %s651_s6 = scalar_lea.hbm %s924_s26, 32  ;;  %s655_s17 = scalar_lea.hbm %s967_s2, 128 }
  0xbb   : > { %p652_p3 = scmp.ne.s32.totalorder %s924_s26, %s651_s6  ;;  %p656_p2 = scmp.lt.u32.totalorder %s924_s26, %s967_s2 }
  0xbc   : > { %p657_p9 = scmp.lt.u32.totalorder %s655_s17, %s651_s6  ;;  %p659_p6 = scmp.lt.u32.totalorder %s651_s6, %s924_s26 }
  0xbd   : > { %p653_p8 = pnand %p652_p3, %p979_p12 }
  0xbe   : > { %p658_p1 = por %p657_p9, %p656_p2 }
  0xbf   : > { %p654_p0 = pneg %p653_p8 }
  0xc0   : > { %p660_p11 = por %p659_p6, %p658_p1 }
  0xc2   : > { %p661_p4 = pnand %p660_p11, %p654_p0 }
  0xc4   : > { %664 = shalt.err (!%p661_p4)
}
  0xc5   : > { %510 = dma.vmem_to_hbm [thread:$0]  (%p979_p12), %s919_s28, 32, %s924_s26, %s377_s27  }
  0xc6 PF: > { %p524_p5 = scmp.ge.s32.totalorder %s707_s12, 2  ;;  %s403_s7 = sand.u32 1, %s695_s9  }
  0xc7   : > { %p980_p7 = scmp.ne.s32.totalorder %s973_s22, 0  ;;  %s404_s16 = scalar_lea.sflag [#allocation4], %s403_s7 }
  0xc9   : > { %p520_p13 = pnand %p524_p5, %p980_p7 }
  0xcb   : > { %690 = dma.done.wait (!%p520_p13), %s404_s16, 32  }
  0xcc   : > { %692 = vsyncadd (!%p520_p13), %s404_s16, 4294967264  ;;  %p18_p10 = scmp.ge.s32.totalorder %s756_s15, 6   ;;  %s981_s9 = smov %s699_s10 }
  0xcd   : > { %s982_s10 = smov %s703_s11  ;;  %s983_s11 = smov %s768_s18 }
  0xce   : > { %s984_s12 = smov %s756_s15  ;;  %20 = sbr.rel (!%p18_p10) target bundleno = 7 (0x7), region = 86 }
  0xd5   :  { %409 = vsyncpa [#allocation3], 1 }
  0xd6   :  { %411 = vsyncpa [#allocation3 + $0x1], 1 }
  0xd7   :  { %412 = vsyncpa [#allocation6], 1 }
  0xd8   :  { %414 = vsyncpa [#allocation6 + $0x1], 1 }
  0xd9   :  { %415 = vsyncpa [#allocation4], 1 }
  0xda   :  { %417 = vsyncpa [#allocation4 + $0x1], 1 }

</bundles_post_ra>
